<compile_context>
chip_gen: v6e
topology: v6e:2x2x1
jax: 0.10.0
libtpu: 0.0.40
codegen_flags: <defaults>
</compile_context>

<pallas_src>
import functools
import math

import jax
import jax.numpy as jnp
from jax.experimental import pallas as pl
from jax.experimental.pallas import tpu as pltpu

D_MODEL = 32
NUM_HEADS = 4
DFF = 128
LN_EPS = 1e-5
BATCH_PER_STEP = 2   # local batches fused per grid step (2-way grid for v7x's 2 TCs)


def _encoder_layer_kernel(x_ref, ln_ref, wqkv_ref, bqkv_ref, wo_ref, bo_ref,
                          w1_ref, b1_ref, w2_ref, b2_ref, o_ref,
                          *, num_heads, seq_len):
    rows, d_model = x_ref.shape
    depth = d_model // num_heads
    n_local = rows // seq_len

    x = x_ref[...].astype(jnp.float32)                 # (R, D) slab, R = BPS * S

    # LayerNorm affine params stacked row-wise: [g_mha, b_mha, g1, b1, g2, b2]
    def ln_row(i):
        return ln_ref[i:i + 1, :]                      # (1, D), lane-aligned

    g_mha, b_mha = ln_row(0), ln_row(1)
    g_ln1, b_ln1 = ln_row(2), ln_row(3)
    g_ln2, b_ln2 = ln_row(4), ln_row(5)

    def layernorm(h, gamma, beta):
        # single-pass biased variance: mean(h^2) - mean(h)^2
        mu = jnp.mean(h, axis=-1, keepdims=True)
        var = jnp.mean(h * h, axis=-1, keepdims=True) - mu * mu
        return (h - mu) * jax.lax.rsqrt(var + LN_EPS) * gamma + beta

    # ---- MultiHeadAttention: shared pre-LN (q = k = v = x) + fused QKV proj.
    xn = layernorm(x, g_mha, b_mha)                                       # (R, D)
    qkv = jnp.dot(xn, wqkv_ref[...],
                  preferred_element_type=jnp.float32) + bqkv_ref[...]     # (R, 3D)

    # Slice per-(local batch, head) tiles directly out of the fused qkv.
    # 1/sqrt(depth) is pre-folded into the Q columns of wqkv / bqkv.
    def stack_heads(col_base):
        return jnp.stack(
            [qkv[b * seq_len:(b + 1) * seq_len,
                 col_base + h * depth:col_base + (h + 1) * depth]
             for b in range(n_local) for h in range(num_heads)],
            axis=0)                                                       # (BPS*H, S, depth)

    q3 = stack_heads(0)
    k3 = stack_heads(d_model)
    v3 = stack_heads(2 * d_model)

    # ---- scaled dot-product attention, batched over (local batch, head).
    s3 = jnp.einsum("bqd,bkd->bqk", q3, k3,
                    preferred_element_type=jnp.float32)                   # (BPS*H, S, S)
    # TODO(synk): mask=None path only; masked_fill branch not implemented.
    p3 = jnp.exp(s3 - jnp.max(s3, axis=-1, keepdims=True))
    c3 = jnp.einsum("bqk,bkd->bqd", p3, v3,
                    preferred_element_type=jnp.float32)                   # (BPS*H, S, depth)
    c3 = c3 * pl.reciprocal(jnp.sum(p3, axis=-1, keepdims=True), approx=True)

    # merge heads back to column order [h*depth, (h+1)*depth) per local batch
    ctx = jnp.concatenate(
        [jnp.concatenate([c3[b * num_heads + h] for h in range(num_heads)],
                         axis=-1)
         for b in range(n_local)], axis=0)                                # (R, D)

    attn_out = jnp.dot(ctx, wo_ref[...],
                       preferred_element_type=jnp.float32) + bo_ref[...]

    # ---- residual + LayerNorm1.
    # TODO(synk): dropout treated as identity (eval/inference mode).
    y1 = layernorm(x + attn_out, g_ln1, b_ln1)

    # ---- feed-forward on the full slab: Linear -> ReLU -> Linear.
    hid = jnp.maximum(
        jnp.dot(y1, w1_ref[...], preferred_element_type=jnp.float32) + b1_ref[...],
        0.0)
    ffn_out = jnp.dot(hid, w2_ref[...],
                      preferred_element_type=jnp.float32) + b2_ref[...]

    # ---- residual + LayerNorm2.
    o_ref[...] = layernorm(y1 + ffn_out, g_ln2, b_ln2).astype(o_ref.dtype)


def transformer_encoder_layer(x, params, *, num_heads=NUM_HEADS,
                              batch_per_step=BATCH_PER_STEP):
    """x: (B, S, D) float32. Returns (B, S, D)."""
    B, S, D = x.shape
    assert D % num_heads == 0
    assert B % batch_per_step == 0
    depth = D // num_heads
    dff = params["w1"].shape[0]

    scale = 1.0 / math.sqrt(depth)
    # PyTorch Linear stores weight as (out, in); transpose so the kernel does x @ W.
    wq = params["wq"].T * scale           # fold attention scale into Q projection
    bq = params["bq"] * scale
    wqkv = jnp.concatenate([wq, params["wk"].T, params["wv"].T], axis=1)   # (D, 3D)
    bqkv = jnp.concatenate([bq, params["bk"], params["bv"]]).reshape(1, 3 * D)
    wo = params["wo"].T
    bo = params["bo"].reshape(1, D)
    w1 = params["w1"].T                   # (D, dff)
    b1 = params["b1"].reshape(1, dff)
    w2 = params["w2"].T                   # (dff, D)
    b2 = params["b2"].reshape(1, D)
    ln_stack = jnp.stack([
        params["ln_mha_g"], params["ln_mha_b"],
        params["ln1_g"], params["ln1_b"],
        params["ln2_g"], params["ln2_b"]], axis=0)                         # (6, D)

    rows = batch_per_step * S
    n_blocks = B // batch_per_step
    x2 = x.reshape(B * S, D)              # fold batch into the row dimension

    row_spec = pl.BlockSpec((rows, D), lambda i: (i, 0))

    def full(shape):
        return pl.BlockSpec(shape, lambda i: (0, 0))

    kernel = functools.partial(_encoder_layer_kernel,
                               num_heads=num_heads, seq_len=S)

    out = pl.pallas_call(
        kernel,
        out_shape=jax.ShapeDtypeStruct((B * S, D), x.dtype),
        grid_spec=pltpu.PrefetchScalarGridSpec(
            num_scalar_prefetch=0,
            grid=(n_blocks,),
            in_specs=[
                row_spec,                 # x slab
                full((6, D)),             # stacked LayerNorm affine params
                full((D, 3 * D)), full((1, 3 * D)),   # fused QKV weight / bias
                full((D, D)), full((1, D)),           # output projection
                full((D, dff)), full((1, dff)),       # FFN layer 1
                full((dff, D)), full((1, D)),         # FFN layer 2
            ],
            out_specs=row_spec,
        ),
        compiler_params=pltpu.CompilerParams(
            dimension_semantics=("parallel",)),
    )(x2, ln_stack, wqkv, bqkv, wo, bo, w1, b1, w2, b2)
    return out.reshape(B, S, D)


def _reference(x, params, num_heads=NUM_HEADS):
    B, S, D = x.shape
    depth = D // num_heads

    def ln(h, g, b):
        mu = h.mean(-1, keepdims=True)
        var = ((h - mu) ** 2).mean(-1, keepdims=True)
        return (h - mu) / jnp.sqrt(var + LN_EPS) * g + b

    xn = ln(x, params["ln_mha_g"], params["ln_mha_b"])
    qp = xn @ params["wq"].T + params["bq"]
    kp = xn @ params["wk"].T + params["bk"]
    vp = xn @ params["wv"].T + params["bv"]

    def split(t):
        return t.reshape(B, S, num_heads, depth).transpose(0, 2, 1, 3)

    qh, kh, vh = split(qp), split(kp), split(vp)
    scores = jnp.einsum("bhqd,bhkd->bhqk", qh, kh) / jnp.sqrt(jnp.float32(depth))
    attn = jax.nn.softmax(scores, axis=-1)
    ctx = jnp.einsum("bhqk,bhkd->bhqd", attn, vh)
    ctx = ctx.transpose(0, 2, 1, 3).reshape(B, S, D)
    attn_out = ctx @ params["wo"].T + params["bo"]

    y1 = ln(x + attn_out, params["ln1_g"], params["ln1_b"])
    hid = jax.nn.relu(y1 @ params["w1"].T + params["b1"])
    ffn_out = hid @ params["w2"].T + params["b2"]
    return ln(y1 + ffn_out, params["ln2_g"], params["ln2_b"])


def _init_params(key, d_model, dff):
    ks = jax.random.split(key, 18)
    init = lambda k, shape: jax.random.normal(k, shape, jnp.float32) * 0.08
    return {
        "wq": init(ks[0], (d_model, d_model)), "bq": init(ks[1], (d_model,)),
        "wk": init(ks[2], (d_model, d_model)), "bk": init(ks[3], (d_model,)),
        "wv": init(ks[4], (d_model, d_model)), "bv": init(ks[5], (d_model,)),
        "wo": init(ks[6], (d_model, d_model)), "bo": init(ks[7], (d_model,)),
        "w1": init(ks[8], (dff, d_model)), "b1": init(ks[9], (dff,)),
        "w2": init(ks[10], (d_model, dff)), "b2": init(ks[11], (d_model,)),
        "ln_mha_g": 1.0 + 0.1 * jax.random.normal(ks[12], (d_model,), jnp.float32),
        "ln_mha_b": 0.1 * jax.random.normal(ks[13], (d_model,), jnp.float32),
        "ln1_g": 1.0 + 0.1 * jax.random.normal(ks[14], (d_model,), jnp.float32),
        "ln1_b": 0.1 * jax.random.normal(ks[15], (d_model,), jnp.float32),
        "ln2_g": 1.0 + 0.1 * jax.random.normal(ks[16], (d_model,), jnp.float32),
        "ln2_b": 0.1 * jax.random.normal(ks[17], (d_model,), jnp.float32),
    }


if __name__ == "__main__":
    B, S = 4, 8
    key = jax.random.PRNGKey(0)
    kx, kp = jax.random.split(key)
    x = jax.random.normal(kx, (B, S, D_MODEL), jnp.float32)
    params = _init_params(kp, D_MODEL, DFF)

    out = transformer_encoder_layer(x, params)
    out = jax.block_until_ready(out)

    ref = _reference(x, params)
    assert out.shape == (B, S, D_MODEL)
    max_diff = jnp.max(jnp.abs(out - ref))
    # tolerance slightly loosened for the approx (EUP) softmax reciprocal
    assert jnp.allclose(out, ref, atol=2e-3, rtol=2e-3), (
        f"max abs diff = {max_diff}")

    print("KERNEL_OK")
</pallas_src>

<mosaic_0001>
module attributes {stable_mosaic.version = 11 : i64} {
  func.func @_encoder_layer_kernel(%arg0: i32, %arg1: memref<16x32xf32, #tpu.memory_space<vmem>>, %arg2: memref<6x32xf32, #tpu.memory_space<vmem>>, %arg3: memref<32x96xf32, #tpu.memory_space<vmem>>, %arg4: memref<1x96xf32, #tpu.memory_space<vmem>>, %arg5: memref<32x32xf32, #tpu.memory_space<vmem>>, %arg6: memref<1x32xf32, #tpu.memory_space<vmem>>, %arg7: memref<32x128xf32, #tpu.memory_space<vmem>>, %arg8: memref<1x128xf32, #tpu.memory_space<vmem>>, %arg9: memref<128x32xf32, #tpu.memory_space<vmem>>, %arg10: memref<1x32xf32, #tpu.memory_space<vmem>>, %arg11: memref<16x32xf32, #tpu.memory_space<vmem>>) attributes {dimension_semantics = [#tpu.dimension_semantics<parallel>], iteration_bounds = array<i64: 2>, scalar_prefetch = 0 : i64, scratch_operands = 0 : i64, tpu.core_type = #tpu.core_type<tc>, window_params = [{transform_indices = @transform_0, window_bounds = array<i64: 16, 32>}, {pipeline_mode = #tpu.pipeline_mode<synchronous>, transform_indices = @transform_1, window_bounds = array<i64: 6, 32>}, {pipeline_mode = #tpu.pipeline_mode<synchronous>, transform_indices = @transform_2, window_bounds = array<i64: 32, 96>}, {pipeline_mode = #tpu.pipeline_mode<synchronous>, transform_indices = @transform_3, window_bounds = array<i64: 1, 96>}, {pipeline_mode = #tpu.pipeline_mode<synchronous>, transform_indices = @transform_4, window_bounds = array<i64: 32, 32>}, {pipeline_mode = #tpu.pipeline_mode<synchronous>, transform_indices = @transform_5, window_bounds = array<i64: 1, 32>}, {pipeline_mode = #tpu.pipeline_mode<synchronous>, transform_indices = @transform_6, window_bounds = array<i64: 32, 128>}, {pipeline_mode = #tpu.pipeline_mode<synchronous>, transform_indices = @transform_7, window_bounds = array<i64: 1, 128>}, {pipeline_mode = #tpu.pipeline_mode<synchronous>, transform_indices = @transform_8, window_bounds = array<i64: 128, 32>}, {pipeline_mode = #tpu.pipeline_mode<synchronous>, transform_indices = @transform_9, window_bounds = array<i64: 1, 32>}, {transform_indices = @transform_10, window_bounds = array<i64: 16, 32>}]} {
    %c0 = arith.constant 0 : index
    %c0_0 = arith.constant 0 : index
    %0 = vector.load %arg1[%c0, %c0_0] : memref<16x32xf32, #tpu.memory_space<vmem>>, vector<16x32xf32>
    %c0_1 = arith.constant 0 : index
    %c0_2 = arith.constant 0 : index
    %1 = vector.load %arg2[%c0_1, %c0_2] : memref<6x32xf32, #tpu.memory_space<vmem>>, vector<1x32xf32>
    %c1 = arith.constant 1 : index
    %c0_3 = arith.constant 0 : index
    %2 = vector.load %arg2[%c1, %c0_3] : memref<6x32xf32, #tpu.memory_space<vmem>>, vector<1x32xf32>
    %c2 = arith.constant 2 : index
    %c0_4 = arith.constant 0 : index
    %3 = vector.load %arg2[%c2, %c0_4] : memref<6x32xf32, #tpu.memory_space<vmem>>, vector<1x32xf32>
    %c3 = arith.constant 3 : index
    %c0_5 = arith.constant 0 : index
    %4 = vector.load %arg2[%c3, %c0_5] : memref<6x32xf32, #tpu.memory_space<vmem>>, vector<1x32xf32>
    %c4 = arith.constant 4 : index
    %c0_6 = arith.constant 0 : index
    %5 = vector.load %arg2[%c4, %c0_6] : memref<6x32xf32, #tpu.memory_space<vmem>>, vector<1x32xf32>
    %c5 = arith.constant 5 : index
    %c0_7 = arith.constant 0 : index
    %6 = vector.load %arg2[%c5, %c0_7] : memref<6x32xf32, #tpu.memory_space<vmem>>, vector<1x32xf32>
    %cst = arith.constant dense<0.000000e+00> : vector<16xf32>
    %7 = vector.multi_reduction <add>, %0, %cst [1] : vector<16x32xf32> to vector<16xf32>
    %8 = vector.shape_cast %7 : vector<16xf32> to vector<16x1xf32>
    %cst_8 = arith.constant 3.200000e+01 : f32
    %9 = vector.broadcast %cst_8 : f32 to vector<16x1xf32>
    %10 = arith.divf %8, %9 : vector<16x1xf32>
    %11 = arith.mulf %0, %0 : vector<16x32xf32>
    %cst_9 = arith.constant dense<0.000000e+00> : vector<16xf32>
    %12 = vector.multi_reduction <add>, %11, %cst_9 [1] : vector<16x32xf32> to vector<16xf32>
    %13 = vector.shape_cast %12 : vector<16xf32> to vector<16x1xf32>
    %cst_10 = arith.constant 3.200000e+01 : f32
    %14 = vector.broadcast %cst_10 : f32 to vector<16x1xf32>
    %15 = arith.divf %13, %14 : vector<16x1xf32>
    %16 = arith.mulf %10, %10 : vector<16x1xf32>
    %17 = arith.subf %15, %16 : vector<16x1xf32>
    %18 = vector.broadcast %10 : vector<16x1xf32> to vector<16x32xf32>
    %19 = arith.subf %0, %18 : vector<16x32xf32>
    %cst_11 = arith.constant 9.99999974E-6 : f32
    %20 = vector.broadcast %cst_11 : f32 to vector<16x1xf32>
    %21 = arith.addf %17, %20 : vector<16x1xf32>
    %22 = math.rsqrt %21 : vector<16x1xf32>
    %23 = vector.broadcast %22 : vector<16x1xf32> to vector<16x32xf32>
    %24 = arith.mulf %19, %23 : vector<16x32xf32>
    %25 = vector.broadcast %1 : vector<1x32xf32> to vector<16x32xf32>
    %26 = arith.mulf %24, %25 : vector<16x32xf32>
    %27 = vector.broadcast %2 : vector<1x32xf32> to vector<16x32xf32>
    %28 = arith.addf %26, %27 : vector<16x32xf32>
    %c0_12 = arith.constant 0 : index
    %c0_13 = arith.constant 0 : index
    %29 = vector.load %arg3[%c0_12, %c0_13] : memref<32x96xf32, #tpu.memory_space<vmem>>, vector<32x96xf32>
    %cst_14 = arith.constant dense<0.000000e+00> : vector<16x96xf32>
    %30 = tpu.matmul %28, %29, %cst_14 {dimension_numbers = #tpu.dot_dimension_numbers<[1], [0], [0], [1], [0, 0, 1, 1], [], []>} : vector<16x32xf32>, vector<32x96xf32>, vector<16x96xf32> -> vector<16x96xf32>
    %c0_15 = arith.constant 0 : index
    %c0_16 = arith.constant 0 : index
    %31 = vector.load %arg4[%c0_15, %c0_16] : memref<1x96xf32, #tpu.memory_space<vmem>>, vector<1x96xf32>
    %32 = vector.broadcast %31 : vector<1x96xf32> to vector<16x96xf32>
    %33 = arith.addf %30, %32 : vector<16x96xf32>
    %34 = vector.extract_strided_slice %33 {offsets = [0, 0], sizes = [8, 8], strides = [1, 1]} : vector<16x96xf32> to vector<8x8xf32>
    %35 = vector.extract_strided_slice %33 {offsets = [0, 8], sizes = [8, 8], strides = [1, 1]} : vector<16x96xf32> to vector<8x8xf32>
    %36 = vector.extract_strided_slice %33 {offsets = [0, 16], sizes = [8, 8], strides = [1, 1]} : vector<16x96xf32> to vector<8x8xf32>
    %37 = vector.extract_strided_slice %33 {offsets = [0, 24], sizes = [8, 8], strides = [1, 1]} : vector<16x96xf32> to vector<8x8xf32>
    %38 = vector.extract_strided_slice %33 {offsets = [8, 0], sizes = [8, 8], strides = [1, 1]} : vector<16x96xf32> to vector<8x8xf32>
    %39 = vector.extract_strided_slice %33 {offsets = [8, 8], sizes = [8, 8], strides = [1, 1]} : vector<16x96xf32> to vector<8x8xf32>
    %40 = vector.extract_strided_slice %33 {offsets = [8, 16], sizes = [8, 8], strides = [1, 1]} : vector<16x96xf32> to vector<8x8xf32>
    %41 = vector.extract_strided_slice %33 {offsets = [8, 24], sizes = [8, 8], strides = [1, 1]} : vector<16x96xf32> to vector<8x8xf32>
    %42 = vector.shape_cast %34 : vector<8x8xf32> to vector<1x8x8xf32>
    %43 = vector.shape_cast %35 : vector<8x8xf32> to vector<1x8x8xf32>
    %44 = vector.shape_cast %36 : vector<8x8xf32> to vector<1x8x8xf32>
    %45 = vector.shape_cast %37 : vector<8x8xf32> to vector<1x8x8xf32>
    %46 = vector.shape_cast %38 : vector<8x8xf32> to vector<1x8x8xf32>
    %47 = vector.shape_cast %39 : vector<8x8xf32> to vector<1x8x8xf32>
    %48 = vector.shape_cast %40 : vector<8x8xf32> to vector<1x8x8xf32>
    %49 = vector.shape_cast %41 : vector<8x8xf32> to vector<1x8x8xf32>
    %50 = tpu.concatenate %42, %43, %44, %45, %46, %47, %48, %49 in 0 : vector<1x8x8xf32>, vector<1x8x8xf32>, vector<1x8x8xf32>, vector<1x8x8xf32>, vector<1x8x8xf32>, vector<1x8x8xf32>, vector<1x8x8xf32>, vector<1x8x8xf32> -> vector<8x8x8xf32>
    %51 = vector.extract_strided_slice %33 {offsets = [0, 32], sizes = [8, 8], strides = [1, 1]} : vector<16x96xf32> to vector<8x8xf32>
    %52 = vector.extract_strided_slice %33 {offsets = [0, 40], sizes = [8, 8], strides = [1, 1]} : vector<16x96xf32> to vector<8x8xf32>
    %53 = vector.extract_strided_slice %33 {offsets = [0, 48], sizes = [8, 8], strides = [1, 1]} : vector<16x96xf32> to vector<8x8xf32>
    %54 = vector.extract_strided_slice %33 {offsets = [0, 56], sizes = [8, 8], strides = [1, 1]} : vector<16x96xf32> to vector<8x8xf32>
    %55 = vector.extract_strided_slice %33 {offsets = [8, 32], sizes = [8, 8], strides = [1, 1]} : vector<16x96xf32> to vector<8x8xf32>
    %56 = vector.extract_strided_slice %33 {offsets = [8, 40], sizes = [8, 8], strides = [1, 1]} : vector<16x96xf32> to vector<8x8xf32>
    %57 = vector.extract_strided_slice %33 {offsets = [8, 48], sizes = [8, 8], strides = [1, 1]} : vector<16x96xf32> to vector<8x8xf32>
    %58 = vector.extract_strided_slice %33 {offsets = [8, 56], sizes = [8, 8], strides = [1, 1]} : vector<16x96xf32> to vector<8x8xf32>
    %59 = vector.shape_cast %51 : vector<8x8xf32> to vector<1x8x8xf32>
    %60 = vector.shape_cast %52 : vector<8x8xf32> to vector<1x8x8xf32>
    %61 = vector.shape_cast %53 : vector<8x8xf32> to vector<1x8x8xf32>
    %62 = vector.shape_cast %54 : vector<8x8xf32> to vector<1x8x8xf32>
    %63 = vector.shape_cast %55 : vector<8x8xf32> to vector<1x8x8xf32>
    %64 = vector.shape_cast %56 : vector<8x8xf32> to vector<1x8x8xf32>
    %65 = vector.shape_cast %57 : vector<8x8xf32> to vector<1x8x8xf32>
    %66 = vector.shape_cast %58 : vector<8x8xf32> to vector<1x8x8xf32>
    %67 = tpu.concatenate %59, %60, %61, %62, %63, %64, %65, %66 in 0 : vector<1x8x8xf32>, vector<1x8x8xf32>, vector<1x8x8xf32>, vector<1x8x8xf32>, vector<1x8x8xf32>, vector<1x8x8xf32>, vector<1x8x8xf32>, vector<1x8x8xf32> -> vector<8x8x8xf32>
    %68 = vector.extract_strided_slice %33 {offsets = [0, 64], sizes = [8, 8], strides = [1, 1]} : vector<16x96xf32> to vector<8x8xf32>
    %69 = vector.extract_strided_slice %33 {offsets = [0, 72], sizes = [8, 8], strides = [1, 1]} : vector<16x96xf32> to vector<8x8xf32>
    %70 = vector.extract_strided_slice %33 {offsets = [0, 80], sizes = [8, 8], strides = [1, 1]} : vector<16x96xf32> to vector<8x8xf32>
    %71 = vector.extract_strided_slice %33 {offsets = [0, 88], sizes = [8, 8], strides = [1, 1]} : vector<16x96xf32> to vector<8x8xf32>
    %72 = vector.extract_strided_slice %33 {offsets = [8, 64], sizes = [8, 8], strides = [1, 1]} : vector<16x96xf32> to vector<8x8xf32>
    %73 = vector.extract_strided_slice %33 {offsets = [8, 72], sizes = [8, 8], strides = [1, 1]} : vector<16x96xf32> to vector<8x8xf32>
    %74 = vector.extract_strided_slice %33 {offsets = [8, 80], sizes = [8, 8], strides = [1, 1]} : vector<16x96xf32> to vector<8x8xf32>
    %75 = vector.extract_strided_slice %33 {offsets = [8, 88], sizes = [8, 8], strides = [1, 1]} : vector<16x96xf32> to vector<8x8xf32>
    %76 = vector.shape_cast %68 : vector<8x8xf32> to vector<1x8x8xf32>
    %77 = vector.shape_cast %69 : vector<8x8xf32> to vector<1x8x8xf32>
    %78 = vector.shape_cast %70 : vector<8x8xf32> to vector<1x8x8xf32>
    %79 = vector.shape_cast %71 : vector<8x8xf32> to vector<1x8x8xf32>
    %80 = vector.shape_cast %72 : vector<8x8xf32> to vector<1x8x8xf32>
    %81 = vector.shape_cast %73 : vector<8x8xf32> to vector<1x8x8xf32>
    %82 = vector.shape_cast %74 : vector<8x8xf32> to vector<1x8x8xf32>
    %83 = vector.shape_cast %75 : vector<8x8xf32> to vector<1x8x8xf32>
    %84 = tpu.concatenate %76, %77, %78, %79, %80, %81, %82, %83 in 0 : vector<1x8x8xf32>, vector<1x8x8xf32>, vector<1x8x8xf32>, vector<1x8x8xf32>, vector<1x8x8xf32>, vector<1x8x8xf32>, vector<1x8x8xf32>, vector<1x8x8xf32> -> vector<8x8x8xf32>
    "tpu.trace_start"() <{level = 10 : i32, message = "bqd,bkd->bqk"}> : () -> ()
    %cst_17 = arith.constant dense<0.000000e+00> : vector<8x8x8xf32>
    %85 = tpu.matmul %50, %67, %cst_17 {dimension_numbers = #tpu.dot_dimension_numbers<[2], [2], [1], [1], [0, 0, 0, 1, 1, 1], [0], [0]>} : vector<8x8x8xf32>, vector<8x8x8xf32>, vector<8x8x8xf32> -> vector<8x8x8xf32>
    "tpu.trace_stop"() : () -> ()
    %cst_18 = arith.constant dense<0xFF800000> : vector<8x8xf32>
    %86 = vector.multi_reduction <maximumf>, %85, %cst_18 [2] : vector<8x8x8xf32> to vector<8x8xf32>
    %87 = vector.shape_cast %86 : vector<8x8xf32> to vector<8x8x1xf32>
    %88 = vector.broadcast %87 : vector<8x8x1xf32> to vector<8x8x8xf32>
    %89 = arith.subf %85, %88 : vector<8x8x8xf32>
    %90 = math.exp %89 : vector<8x8x8xf32>
    "tpu.trace_start"() <{level = 10 : i32, message = "bqk,bkd->bqd"}> : () -> ()
    %cst_19 = arith.constant dense<0.000000e+00> : vector<8x8x8xf32>
    %91 = tpu.matmul %90, %84, %cst_19 {dimension_numbers = #tpu.dot_dimension_numbers<[2], [1], [1], [2], [0, 0, 0, 1, 1, 2], [0], [0]>} : vector<8x8x8xf32>, vector<8x8x8xf32>, vector<8x8x8xf32> -> vector<8x8x8xf32>
    "tpu.trace_stop"() : () -> ()
    %cst_20 = arith.constant dense<0.000000e+00> : vector<8x8xf32>
    %92 = vector.multi_reduction <add>, %90, %cst_20 [2] : vector<8x8x8xf32> to vector<8x8xf32>
    %93 = vector.shape_cast %92 : vector<8x8xf32> to vector<8x8x1xf32>
    %94 = tpu.reciprocal %93 {approx = true} : vector<8x8x1xf32> -> vector<8x8x1xf32>
    %95 = vector.broadcast %94 : vector<8x8x1xf32> to vector<8x8x8xf32>
    %96 = arith.mulf %91, %95 : vector<8x8x8xf32>
    %97 = vector.extract_strided_slice %96 {offsets = [0, 0, 0], sizes = [1, 8, 8], strides = [1, 1, 1]} : vector<8x8x8xf32> to vector<1x8x8xf32>
    %98 = vector.shape_cast %97 : vector<1x8x8xf32> to vector<8x8xf32>
    %99 = vector.extract_strided_slice %96 {offsets = [1, 0, 0], sizes = [1, 8, 8], strides = [1, 1, 1]} : vector<8x8x8xf32> to vector<1x8x8xf32>
    %100 = vector.shape_cast %99 : vector<1x8x8xf32> to vector<8x8xf32>
    %101 = vector.extract_strided_slice %96 {offsets = [2, 0, 0], sizes = [1, 8, 8], strides = [1, 1, 1]} : vector<8x8x8xf32> to vector<1x8x8xf32>
    %102 = vector.shape_cast %101 : vector<1x8x8xf32> to vector<8x8xf32>
    %103 = vector.extract_strided_slice %96 {offsets = [3, 0, 0], sizes = [1, 8, 8], strides = [1, 1, 1]} : vector<8x8x8xf32> to vector<1x8x8xf32>
    %104 = vector.shape_cast %103 : vector<1x8x8xf32> to vector<8x8xf32>
    %105 = tpu.concatenate %98, %100, %102, %104 in 1 : vector<8x8xf32>, vector<8x8xf32>, vector<8x8xf32>, vector<8x8xf32> -> vector<8x32xf32>
    %106 = vector.extract_strided_slice %96 {offsets = [4, 0, 0], sizes = [1, 8, 8], strides = [1, 1, 1]} : vector<8x8x8xf32> to vector<1x8x8xf32>
    %107 = vector.shape_cast %106 : vector<1x8x8xf32> to vector<8x8xf32>
    %108 = vector.extract_strided_slice %96 {offsets = [5, 0, 0], sizes = [1, 8, 8], strides = [1, 1, 1]} : vector<8x8x8xf32> to vector<1x8x8xf32>
    %109 = vector.shape_cast %108 : vector<1x8x8xf32> to vector<8x8xf32>
    %110 = vector.extract_strided_slice %96 {offsets = [6, 0, 0], sizes = [1, 8, 8], strides = [1, 1, 1]} : vector<8x8x8xf32> to vector<1x8x8xf32>
    %111 = vector.shape_cast %110 : vector<1x8x8xf32> to vector<8x8xf32>
    %112 = vector.extract_strided_slice %96 {offsets = [7, 0, 0], sizes = [1, 8, 8], strides = [1, 1, 1]} : vector<8x8x8xf32> to vector<1x8x8xf32>
    %113 = vector.shape_cast %112 : vector<1x8x8xf32> to vector<8x8xf32>
    %114 = tpu.concatenate %107, %109, %111, %113 in 1 : vector<8x8xf32>, vector<8x8xf32>, vector<8x8xf32>, vector<8x8xf32> -> vector<8x32xf32>
    %115 = tpu.concatenate %105, %114 in 0 : vector<8x32xf32>, vector<8x32xf32> -> vector<16x32xf32>
    %c0_21 = arith.constant 0 : index
    %c0_22 = arith.constant 0 : index
    %116 = vector.load %arg5[%c0_21, %c0_22] : memref<32x32xf32, #tpu.memory_space<vmem>>, vector<32x32xf32>
    %cst_23 = arith.constant dense<0.000000e+00> : vector<16x32xf32>
    %117 = tpu.matmul %115, %116, %cst_23 {dimension_numbers = #tpu.dot_dimension_numbers<[1], [0], [0], [1], [0, 0, 1, 1], [], []>} : vector<16x32xf32>, vector<32x32xf32>, vector<16x32xf32> -> vector<16x32xf32>
    %c0_24 = arith.constant 0 : index
    %c0_25 = arith.constant 0 : index
    %118 = vector.load %arg6[%c0_24, %c0_25] : memref<1x32xf32, #tpu.memory_space<vmem>>, vector<1x32xf32>
    %119 = vector.broadcast %118 : vector<1x32xf32> to vector<16x32xf32>
    %120 = arith.addf %117, %119 : vector<16x32xf32>
    %121 = arith.addf %0, %120 : vector<16x32xf32>
    %cst_26 = arith.constant dense<0.000000e+00> : vector<16xf32>
    %122 = vector.multi_reduction <add>, %121, %cst_26 [1] : vector<16x32xf32> to vector<16xf32>
    %123 = vector.shape_cast %122 : vector<16xf32> to vector<16x1xf32>
    %cst_27 = arith.constant 3.200000e+01 : f32
    %124 = vector.broadcast %cst_27 : f32 to vector<16x1xf32>
    %125 = arith.divf %123, %124 : vector<16x1xf32>
    %126 = arith.mulf %121, %121 : vector<16x32xf32>
    %cst_28 = arith.constant dense<0.000000e+00> : vector<16xf32>
    %127 = vector.multi_reduction <add>, %126, %cst_28 [1] : vector<16x32xf32> to vector<16xf32>
    %128 = vector.shape_cast %127 : vector<16xf32> to vector<16x1xf32>
    %cst_29 = arith.constant 3.200000e+01 : f32
    %129 = vector.broadcast %cst_29 : f32 to vector<16x1xf32>
    %130 = arith.divf %128, %129 : vector<16x1xf32>
    %131 = arith.mulf %125, %125 : vector<16x1xf32>
    %132 = arith.subf %130, %131 : vector<16x1xf32>
    %133 = vector.broadcast %125 : vector<16x1xf32> to vector<16x32xf32>
    %134 = arith.subf %121, %133 : vector<16x32xf32>
    %cst_30 = arith.constant 9.99999974E-6 : f32
    %135 = vector.broadcast %cst_30 : f32 to vector<16x1xf32>
    %136 = arith.addf %132, %135 : vector<16x1xf32>
    %137 = math.rsqrt %136 : vector<16x1xf32>
    %138 = vector.broadcast %137 : vector<16x1xf32> to vector<16x32xf32>
    %139 = arith.mulf %134, %138 : vector<16x32xf32>
    %140 = vector.broadcast %3 : vector<1x32xf32> to vector<16x32xf32>
    %141 = arith.mulf %139, %140 : vector<16x32xf32>
    %142 = vector.broadcast %4 : vector<1x32xf32> to vector<16x32xf32>
    %143 = arith.addf %141, %142 : vector<16x32xf32>
    %c0_31 = arith.constant 0 : index
    %c0_32 = arith.constant 0 : index
    %144 = vector.load %arg7[%c0_31, %c0_32] : memref<32x128xf32, #tpu.memory_space<vmem>>, vector<32x128xf32>
    %cst_33 = arith.constant dense<0.000000e+00> : vector<16x128xf32>
    %145 = tpu.matmul %143, %144, %cst_33 {dimension_numbers = #tpu.dot_dimension_numbers<[1], [0], [0], [1], [0, 0, 1, 1], [], []>} : vector<16x32xf32>, vector<32x128xf32>, vector<16x128xf32> -> vector<16x128xf32>
    %c0_34 = arith.constant 0 : index
    %c0_35 = arith.constant 0 : index
    %146 = vector.load %arg8[%c0_34, %c0_35] : memref<1x128xf32, #tpu.memory_space<vmem>>, vector<1x128xf32>
    %147 = vector.broadcast %146 : vector<1x128xf32> to vector<16x128xf32>
    %148 = arith.addf %145, %147 : vector<16x128xf32>
    %cst_36 = arith.constant 0.000000e+00 : f32
    %149 = vector.broadcast %cst_36 : f32 to vector<16x128xf32>
    %150 = arith.maximumf %148, %149 : vector<16x128xf32>
    %c0_37 = arith.constant 0 : index
    %c0_38 = arith.constant 0 : index
    %151 = vector.load %arg9[%c0_37, %c0_38] : memref<128x32xf32, #tpu.memory_space<vmem>>, vector<128x32xf32>
    %cst_39 = arith.constant dense<0.000000e+00> : vector<16x32xf32>
    %152 = tpu.matmul %150, %151, %cst_39 {dimension_numbers = #tpu.dot_dimension_numbers<[1], [0], [0], [1], [0, 0, 1, 1], [], []>} : vector<16x128xf32>, vector<128x32xf32>, vector<16x32xf32> -> vector<16x32xf32>
    %c0_40 = arith.constant 0 : index
    %c0_41 = arith.constant 0 : index
    %153 = vector.load %arg10[%c0_40, %c0_41] : memref<1x32xf32, #tpu.memory_space<vmem>>, vector<1x32xf32>
    %154 = vector.broadcast %153 : vector<1x32xf32> to vector<16x32xf32>
    %155 = arith.addf %152, %154 : vector<16x32xf32>
    %156 = arith.addf %143, %155 : vector<16x32xf32>
    %cst_42 = arith.constant dense<0.000000e+00> : vector<16xf32>
    %157 = vector.multi_reduction <add>, %156, %cst_42 [1] : vector<16x32xf32> to vector<16xf32>
    %158 = vector.shape_cast %157 : vector<16xf32> to vector<16x1xf32>
    %cst_43 = arith.constant 3.200000e+01 : f32
    %159 = vector.broadcast %cst_43 : f32 to vector<16x1xf32>
    %160 = arith.divf %158, %159 : vector<16x1xf32>
    %161 = arith.mulf %156, %156 : vector<16x32xf32>
    %cst_44 = arith.constant dense<0.000000e+00> : vector<16xf32>
    %162 = vector.multi_reduction <add>, %161, %cst_44 [1] : vector<16x32xf32> to vector<16xf32>
    %163 = vector.shape_cast %162 : vector<16xf32> to vector<16x1xf32>
    %cst_45 = arith.constant 3.200000e+01 : f32
    %164 = vector.broadcast %cst_45 : f32 to vector<16x1xf32>
    %165 = arith.divf %163, %164 : vector<16x1xf32>
    %166 = arith.mulf %160, %160 : vector<16x1xf32>
    %167 = arith.subf %165, %166 : vector<16x1xf32>
    %168 = vector.broadcast %160 : vector<16x1xf32> to vector<16x32xf32>
    %169 = arith.subf %156, %168 : vector<16x32xf32>
    %cst_46 = arith.constant 9.99999974E-6 : f32
    %170 = vector.broadcast %cst_46 : f32 to vector<16x1xf32>
    %171 = arith.addf %167, %170 : vector<16x1xf32>
    %172 = math.rsqrt %171 : vector<16x1xf32>
    %173 = vector.broadcast %172 : vector<16x1xf32> to vector<16x32xf32>
    %174 = arith.mulf %169, %173 : vector<16x32xf32>
    %175 = vector.broadcast %5 : vector<1x32xf32> to vector<16x32xf32>
    %176 = arith.mulf %174, %175 : vector<16x32xf32>
    %177 = vector.broadcast %6 : vector<1x32xf32> to vector<16x32xf32>
    %178 = arith.addf %176, %177 : vector<16x32xf32>
    %c0_47 = arith.constant 0 : index
    %c0_48 = arith.constant 0 : index
    %179 = vector.load %arg11[%c0_47, %c0_48] : memref<16x32xf32, #tpu.memory_space<vmem>>, vector<16x32xf32>
    tpu.vector_store %arg11[%c0_47, %c0_48], %178 {strides = array<i32>} : memref<16x32xf32, #tpu.memory_space<vmem>>, vector<16x32xf32>,
    return
  }
  func.func @transform_0(%arg0: i32) -> (i32, i32) {
    %c0_i32 = arith.constant 0 : i32
    %c0_i32_0 = arith.constant 0 : i32
    return %arg0, %c0_i32 : i32, i32
  }
  func.func @transform_1(%arg0: i32) -> (i32, i32) {
    %c0_i32 = arith.constant 0 : i32
    %c0_i32_0 = arith.constant 0 : i32
    %c0_i32_1 = arith.constant 0 : i32
    return %c0_i32, %c0_i32_0 : i32, i32
  }
  func.func @transform_2(%arg0: i32) -> (i32, i32) {
    %c0_i32 = arith.constant 0 : i32
    %c0_i32_0 = arith.constant 0 : i32
    %c0_i32_1 = arith.constant 0 : i32
    return %c0_i32, %c0_i32_0 : i32, i32
  }
  func.func @transform_3(%arg0: i32) -> (i32, i32) {
    %c0_i32 = arith.constant 0 : i32
    %c0_i32_0 = arith.constant 0 : i32
    %c0_i32_1 = arith.constant 0 : i32
    return %c0_i32, %c0_i32_0 : i32, i32
  }
  func.func @transform_4(%arg0: i32) -> (i32, i32) {
    %c0_i32 = arith.constant 0 : i32
    %c0_i32_0 = arith.constant 0 : i32
    %c0_i32_1 = arith.constant 0 : i32
    return %c0_i32, %c0_i32_0 : i32, i32
  }
  func.func @transform_5(%arg0: i32) -> (i32, i32) {
    %c0_i32 = arith.constant 0 : i32
    %c0_i32_0 = arith.constant 0 : i32
    %c0_i32_1 = arith.constant 0 : i32
    return %c0_i32, %c0_i32_0 : i32, i32
  }
  func.func @transform_6(%arg0: i32) -> (i32, i32) {
    %c0_i32 = arith.constant 0 : i32
    %c0_i32_0 = arith.constant 0 : i32
    %c0_i32_1 = arith.constant 0 : i32
    return %c0_i32, %c0_i32_0 : i32, i32
  }
  func.func @transform_7(%arg0: i32) -> (i32, i32) {
    %c0_i32 = arith.constant 0 : i32
    %c0_i32_0 = arith.constant 0 : i32
    %c0_i32_1 = arith.constant 0 : i32
    return %c0_i32, %c0_i32_0 : i32, i32
  }
  func.func @transform_8(%arg0: i32) -> (i32, i32) {
    %c0_i32 = arith.constant 0 : i32
    %c0_i32_0 = arith.constant 0 : i32
    %c0_i32_1 = arith.constant 0 : i32
    return %c0_i32, %c0_i32_0 : i32, i32
  }
  func.func @transform_9(%arg0: i32) -> (i32, i32) {
    %c0_i32 = arith.constant 0 : i32
    %c0_i32_0 = arith.constant 0 : i32
    %c0_i32_1 = arith.constant 0 : i32
    return %c0_i32, %c0_i32_0 : i32, i32
  }
  func.func @transform_10(%arg0: i32) -> (i32, i32) {
    %c0_i32 = arith.constant 0 : i32
    %c0_i32_0 = arith.constant 0 : i32
    return %arg0, %c0_i32 : i32, i32
  }
}

</mosaic_0001>

<bundles_post_ra>
// kernel: tpu_custom_call.1
= control target key start
LH: loop header
LB: loop body
LE: loop exit
PB: predicated region body
PF: predicated region fallthrough
CT: control target
= control target key end

     0   :  { %15 = vsyncpa [#allocation3], 0  ;;  %s3180_s0 = inlined_call_operand.vmem [shape: f32[32,32], index: 0, kind: input, shape index: {}]   ;;  %s3181_s1 = inlined_call_operand.vmem [shape: f32[6,32], index: 1, kind: input, shape index: {}]   ;;  %s3182_s2 = inlined_call_operand.vmem [shape: f32[32,96], index: 2, kind: input, shape index: {}]   ;;  %s3183_s3 = inlined_call_operand.vmem [shape: f32[1,96], index: 3, kind: input, shape index: {}]   ;;  %s3184_s4 = inlined_call_operand.vmem [shape: f32[32,32], index: 4, kind: input, shape index: {}]   ;;  %s3185_s5 = inlined_call_operand.vmem [shape: f32[1,32], index: 5, kind: input, shape index: {}]   ;;  %s3186_s6 = inlined_call_operand.vmem [shape: f32[32,128], index: 6, kind: input, shape index: {}]   ;;  %s3187_s7 = inlined_call_operand.vmem [shape: f32[1,128], index: 7, kind: input, shape index: {}]   ;;  %s3188_s8 = inlined_call_operand.vmem [shape: f32[128,32], index: 8, kind: input, shape index: {}]   ;;  %s3189_s9 = inlined_call_operand.vmem [shape: f32[1,32], index: 9, kind: input, shape index: {}]   ;;  %s3190_s10 = inlined_call_operand.hbm [shape: f32[32,32], index: 10, kind: output, shape index: {}]  }
   0x1   :  { %17 = vsyncpa [#allocation3 + $0x1], 0  ;;  %s2798_s13 = smov 0   ;;  %s2800_s14 = smov 0  }
   0x2   :  { %s2802_s15 = smov 0   ;;  %s2804_s16 = smov 0  }
   0x3 LB: > { %s2819_s17 = sadd.s32 4294967295, %s2729_s16   ;;  %s2306_s18 = sadd.s32 4294967294, %s2729_s16   ;;  %s2729_s16 = sphi %s2804_s16, %s3198_s16   ;;  %s2725_s15 = sphi %s2802_s15, %s3197_s15   ;;  %s2721_s14 = sphi %s2800_s14, %s3196_s14   ;;  %s2717_s13 = sphi %s2798_s13, %s3195_s13  }
   0x4   : > { %s2823_s19 = sadd.s32 1, %s2729_s16   ;;  %s245_s20 = sadd.s32 1, %s2725_s15 }
   0x5   : > { %s242_s21 = ssub.s32 %s2729_s16, %s2823_s19  ;;  %p255_p0 = scmp.ne.s32.totalorder %s2725_s15, %s2721_s14 }
   0x6   : > { %p243_p1 = scmp.eq.s32.totalorder %s242_s21, 0  ;;  %p256_p2 = scmp.eq.s32.totalorder %s2819_s17, 1 }
   0x7   : > { %p261_p3 = scmp.ne.s32.totalorder %s2721_s14, %s2717_s13  ;;  %p262_p4 = scmp.eq.s32.totalorder %s2306_s18, 1 }
   0x8   : > { %s2834_s22 = scalar_select %p243_p1, %s2725_s15, %s245_s20  }
   0x9   : > { %p2836_p5 = por %p256_p2, %p255_p0  ;;  %p2840_p6 = por %p262_p4, %p261_p3 }
   0xa   : > { %p2309_p7 = scmp.ge.s32.totalorder %s2729_s16, 1  ;;  %p316_p8 = scmp.lt.s32.totalorder %s2729_s16, 3 }
   0xc   : > { %p317_p9 = pnand %p2309_p7, %p316_p8 }
   0xd   : > { %s2311_s25 = sshll.u32 (!%p317_p9), %s2819_s17, 1  ;;  %s2733_s18 = smov (!%p317_p9), 112  }
   0xe   : > { %320 = sbr.rel (%p317_p9) target bundleno = 2253 (0x8cd), region = 60  ;;  %p355_p10 = scmp.lt.s32.totalorder (!%p317_p9), %s2311_s25, 3 }
   0xf   : > { %s2734_s20 = smov (!%p317_p9), 120   ;;  %s2735_s21 = smov (!%p317_p9), 104  }
  0x10   : > { %s351_s27 = sand.u32 (!%p317_p9), 1, %s2721_s14  }
  0x11   : > { %s2310_s28 = sshll.u32 (!%p317_p9), %s351_s27, 4 }
  0x13   : > { %s3200_s25 = smov (!%p355_p10, %s2311_s25), 3  ;;  %vm369_vm0 = vcmask 261120   ;;  %v416_v8 = vld [vmem:[%s3182_s2 + $0x18] sm:$0xff]  ;;  %v415_v9 = vld [vmem:[%s3182_s2 + $0x10] sm:$0xff]  ;;  %v414_v10 = vld [vmem:[%s3182_s2 + $0x8] sm:$0xff]  ;;  %v2731_v38 = vmov 0.0  }
  0x14   : > { %s2312_s26 = sshll.u32 %s3200_s25, 3  ;;  %2427 = vmatprep.subr.mxu1 %v416_v8  ;;  %v413_v11 = vld [vmem:[%s3182_s2] sm:$0xff]  ;;  %2448 = vmatprep.subr.mxu0 %v2731_v38  ;;  %vm2732_vm1 = vmmov 0   ;;  %s2736_s25 = smov 96   ;;  %vm521_vm2 = vcmask 64512   ;;  %vm1837_vm3 = vcmask 130048  }
  0x15   : > { %s358_s29 = scalar_lea.vmem %s3180_s0, %s2312_s26  ;;  %2428 = vmatpush3.msra.mxu1 %v416_v8  ;;  %v2313_v28 = vld [vmem:[%s3181_s1] ss:$0 sm:$0xff]  ;;  %v2314_v30 = vld [vmem:[%s3181_s1 + $0x1] ss:$0 sm:$0xff]  ;;  %2450 = vmatprep.mubr.msk.f32.mxu0 %vm2732_vm1, %v2731_v38  ;;  %s2737_s26 = smov 64   ;;  %vm1839_vm4 = vcmask 195584  }
  0x16   : > { %v2850_v0 = vld [vmem:[%s358_s29] sm:$0xff]  ;;  %v2852_v1 = vld [vmem:[%s358_s29 + $0x8] sm:$0xff]  ;;  %2429 = vmatprep.subr.mxu1 %v415_v9 }
  0x17   : > { %v370_v2 = vsel %vm369_vm0, %v2850_v0, 0.0  ;;  %v379_v3 = vmul.f32 %v2850_v0, %v2850_v0  ;;  %v380_v4 = vmul.f32 %v2852_v1, %v2852_v1  ;;  %v373_v6 = vsel %vm369_vm0, %v2852_v1, 0.0  ;;  %2430 = vmatpush3.msra.mxu1 %v415_v9  ;;  %v2315_v40 = vld [vmem:[%s3183_s3] ss:$0 sm:$0xff] }
  0x18   : > { %371 = vadd.xlane.f32.xlu0 %v370_v2  ;;  %2431 = vmatprep.subr.mxu1 %v414_v10 }
  0x19   : > { %v381_v5 = vsel %vm369_vm0, %v379_v3, 0.0  ;;  %v384_v7 = vsel %vm369_vm0, %v380_v4, 0.0  ;;  %2432 = vmatpush3.msra.mxu1 %v414_v10 }
  0x1a   : > { %382 = vadd.xlane.f32.xlu1 %v381_v5  ;;  %2433 = vmatprep.subr.mxu1 %v413_v11 }
  0x1b   : > { %2434 = vmatpush3.msra.mxu1 %v413_v11 }
  0x1c   : > { %374 = vadd.xlane.f32.xlu0 %v373_v6  ;;  %2438 = vmatprep.subr.mxu1 %v2731_v38 }
  0x1e   : > { %385 = vadd.xlane.f32.xlu1 %v384_v7 }
  0xa1   : > { %v372_v12 = vpop.xlane.xlu0 %371 }
  0xa2   : > { %v377_v13 = vmul.f32 0.03125, %v372_v12 }
  0xa3   : > { %v383_v14 = vpop.xlane.xlu1 %382 }
  0xa4   : > { %v389_v15 = vmul.f32 %v377_v13, %v377_v13  ;;  %v387_v16 = vmul.f32 0.03125, %v383_v14  ;;  %v393_v26 = vsub.f32 %v2850_v0, %v377_v13 }
  0xa5   : > { %v375_v17 = vpop.xlane.xlu0 %374 }
  0xa6   : > { %v391_v18 = vsub.f32 %v387_v16, %v389_v15  ;;  %v378_v19 = vmul.f32 0.03125, %v375_v17 }
  0xa7   : > { %v386_v20 = vpop.xlane.xlu1 %385 }
  0xa8   : > { %v395_v21 = vadd.f32 1e-05, %v391_v18  ;;  %v390_v22 = vmul.f32 %v378_v19, %v378_v19  ;;  %v388_v23 = vmul.f32 0.03125, %v386_v20  ;;  %v394_v31 = vsub.f32 %v2852_v1, %v378_v19 }
  0xaa   : > { %2625 = vrsqrt.f32 %v395_v21  ;;  %v392_v24 = vsub.f32 %v388_v23, %v390_v22 }
  0xac   : > { %v396_v25 = vadd.f32 1e-05, %v392_v24 }
  0xae   : > { %2627 = vrsqrt.f32 %v396_v25 }
  0xb7   : > { %v2626_v27 = vpop.eup %2625 }
  0xb8   : > { %v399_v29 = vmul.f32 %v2626_v27, %v393_v26 }
  0xba   : > { %v405_v32 = vmul.f32 %v2313_v28, %v399_v29 }
  0xbb   : > { %v2628_v33 = vpop.eup %2627 }
  0xbc   : > { %v400_v34 = vmul.f32 %v2628_v33, %v394_v31  ;;  %v411_v35 = vadd.f32 %v2314_v30, %v405_v32 }
  0xbe   : > { %v406_v36 = vmul.f32 %v2313_v28, %v400_v34  ;;  %2435 = vmatprep.mubr.msk.f32.mxu1 %vm369_vm0, %v411_v35 }
  0xc0   : > { %v412_v37 = vadd.f32 %v2314_v30, %v406_v36 }
  0xc2   : > { %2436 = vmatmul.mubr.msk.f32.vlgmr.msra.gmra.mxu1 %vm369_vm0, %v412_v37 }
  0xc3   : > { %2440 = vmatprep.mubr.msk.f32.mxu1 %vm2732_vm1, %v2731_v38 }
 0x182   : > { %v2437_v39 = vpop.f32.mrf.mxu1 }
 0x183   : > { %v502_v43 = vadd.f32 %v2437_v39, %v2315_v40 }
 0x184   : > { %v496_v41 = vpop.f32.mrf.mxu1 }
 0x185   : > { %v497_v42 = vadd.f32 %v2315_v40, %v496_v41 }
 0x187   : > { %508 = vrot.lane.b32.xlu1 %v497_v42, %s2733_s18  ;;  %506 = vrot.lane.b32.xlu0 %v497_v42, %s2734_s20 }
 0x18b   : > { %510 = vrot.lane.b32.xlu1 %v497_v42, %s2735_s21  ;;  %515 = vrot.lane.b32.xlu0 %v502_v43, %s2733_s18  ;;  %s3191_s18 = smov 8  }
 0x18f   : > { %513 = vrot.lane.b32.xlu1 %v502_v43, %s2734_s20  ;;  %519 = vrot.lane.b32.xlu0 %v497_v42, %s2736_s25  ;;  %s2358_s20 = sshll.u32 %s2819_s17, 8  ;;  %s3139_s17 = scalar_lea.sflag [#allocation3], %s351_s27 }
 0x190   : > { %s3133_s29 = scalar_lea.hbm %s3190_s10, %s2358_s20 }
 0x193   : > { %517 = vrot.lane.b32.xlu1 %v502_v43, %s2735_s21  ;;  %s353_s21 = scalar_lea.vmem [#allocation2], %s2310_s28 }
 0x1f9   : > { %v509_v44 = vpop.permute.xlu1 %508  ;;  %v507_v45 = vpop.permute.xlu0 %506 }
 0x1fa   : > { %672 = vrot.lane.b32.xlu0 %v509_v44, %s2736_s25  ;;  %596 = vrot.lane.b32.xlu1 %v507_v45, %s2736_s25 }
 0x1fd   : > { %v511_v46 = vpop.permute.xlu1 %510  ;;  %v2895_v47 = vpop.permute.xlu0 %515 }
 0x1fe   : > { %824 = vrot.lane.b32.xlu0 %v502_v43, %s2736_s25  ;;  %748 = vrot.lane.b32.xlu1 %v511_v46, %s2736_s25 }
 0x201   : > { %v514_v48 = vpop.permute.xlu1 %513  ;;  %v520_v49 = vpop.permute.xlu0 %519 }
 0x202   : > { %900 = vrot.lane.b32.xlu1 %v514_v48, %s2736_s25  ;;  %976 = vrot.lane.b32.xlu0 %v2895_v47, %s2736_s25 }
 0x203   : > { %2439 = vmatpush3.xpose.msk.msra.mxu1 %vm521_vm2, %v520_v49 }
 0x204   : > { %2443 = vmatprep.subr.mxu1 %v2731_v38 }
 0x205   : > { %v2900_v50 = vpop.permute.xlu1 %517 }
 0x206   : > { %2441 = vmatmul.mubr.msk.f32.vlgmr.msra.gmra.mxu1 %vm521_vm2, %v497_v42  ;;  %1052 = vrot.lane.b32.xlu1 %v2900_v50, %s2736_s25  ;;  %s2739_s25 = smov 16  }
 0x207   : > { %1176 = vrot.lane.b32.xlu0 %v497_v42, %s2737_s26  ;;  %2445 = vmatprep.mubr.msk.f32.mxu1 %vm2732_vm1, %v2731_v38 }
 0x20a   : > { %1556 = vrot.lane.b32.xlu1 %v514_v48, %s2737_s26 }
 0x20b   : > { %1480 = vrot.lane.b32.xlu0 %v502_v43, %s2737_s26 }
 0x20e   : > { %1252 = vrot.lane.b32.xlu1 %v507_v45, %s2737_s26 }
 0x212   : > { %1328 = vrot.lane.b32.xlu1 %v509_v44, %s2737_s26 }
 0x216   : > { %1404 = vrot.lane.b32.xlu1 %v511_v46, %s2737_s26 }
 0x26c   : > { %v597_v51 = vpop.permute.xlu1 %596  ;;  %v673_v52 = vpop.permute.xlu0 %672 }
 0x26d   : > { %2444 = vmatpush3.xpose.msk.msra.mxu1 %vm521_vm2, %v597_v51  ;;  %2449 = vmatpush3.xpose.msk.msra.mxu0 %vm521_vm2, %v673_v52 }
 0x26e   : > { %2453 = vmatprep.subr.mxu1 %v2731_v38  ;;  %2458 = vmatprep.subr.mxu0 %v2731_v38 }
 0x270   : > { %v749_v53 = vpop.permute.xlu1 %748  ;;  %2446 = vmatmul.mubr.msk.f32.vlgmr.msra.gmra.mxu1 %vm521_vm2, %v507_v45  ;;  %2451 = vmatmul.mubr.msk.f32.vlgmr.msra.gmra.mxu0 %vm521_vm2, %v509_v44  ;;  %v825_v54 = vpop.permute.xlu0 %824 }
 0x271   : > { %2454 = vmatpush3.xpose.msk.msra.mxu1 %vm521_vm2, %v749_v53  ;;  %2459 = vmatpush3.xpose.msk.msra.mxu0 %vm521_vm2, %v825_v54 }
 0x272   : > { %2455 = vmatprep.mubr.msk.f32.mxu1 %vm2732_vm1, %v2731_v38  ;;  %2460 = vmatprep.mubr.msk.f32.mxu0 %vm2732_vm1, %v2731_v38 }
 0x273   : > { %2463 = vmatprep.subr.mxu1 %v2731_v38  ;;  %2468 = vmatprep.subr.mxu0 %v2731_v38 }
 0x274   : > { %v901_v55 = vpop.permute.xlu1 %900  ;;  %2456 = vmatmul.mubr.msk.f32.vlgmr.msra.gmra.mxu1 %vm521_vm2, %v511_v46  ;;  %2461 = vmatmul.mubr.msk.f32.vlgmr.msra.gmra.mxu0 %vm521_vm2, %v502_v43  ;;  %v977_v56 = vpop.permute.xlu0 %976 }
 0x275   : > { %2464 = vmatpush3.xpose.msk.msra.mxu1 %vm521_vm2, %v901_v55  ;;  %2469 = vmatpush3.xpose.msk.msra.mxu0 %vm521_vm2, %v977_v56 }
 0x276   : > { %2465 = vmatprep.mubr.msk.f32.mxu1 %vm2732_vm1, %v2731_v38  ;;  %2470 = vmatprep.mubr.msk.f32.mxu0 %vm2732_vm1, %v2731_v38 }
 0x277   : > { %2473 = vmatprep.subr.mxu1 %v2731_v38  ;;  %2478 = vmatprep.subr.mxu0 %v2731_v38 }
 0x278   : > { %v1053_v57 = vpop.permute.xlu1 %1052  ;;  %2466 = vmatmul.mubr.msk.f32.vlgmr.msra.gmra.mxu1 %vm521_vm2, %v514_v48  ;;  %2471 = vmatmul.mubr.msk.f32.vlgmr.msra.gmra.mxu0 %vm521_vm2, %v2895_v47 }
 0x279   : > { %v1177_v58 = vpop.permute.xlu0 %1176  ;;  %2474 = vmatpush3.xpose.msk.msra.mxu1 %vm521_vm2, %v1053_v57  ;;  %2475 = vmatprep.mubr.msk.f32.mxu1 %vm2732_vm1, %v2731_v38 }
 0x27a   : > { %2479 = vmatpush3.msra.mxu0 %v1177_v58  ;;  %2483 = vmatprep.subr.mxu1 %v2731_v38 }
 0x27b   : > { %2480 = vmatprep.mubr.msk.f32.mxu0 %vm2732_vm1, %v2731_v38  ;;  %2488 = vmatprep.subr.mxu0 %v2731_v38 }
 0x27c   : > { %v2946_v59 = vpop.permute.xlu1 %1556  ;;  %2476 = vmatmul.mubr.msk.f32.vlgmr.msra.gmra.mxu1 %vm521_vm2, %v2900_v50 }
 0x27d   : > { %2485 = vmatprep.mubr.msk.f32.mxu1 %vm2732_vm1, %v2731_v38  ;;  %v1481_v23 = vpop.permute.xlu0 %1480 }
 0x280   : > { %v1253_v60 = vpop.permute.xlu1 %1252 }
 0x281   : > { %2484 = vmatpush3.msra.mxu1 %v1253_v60 }
 0x282   : > { %2493 = vmatprep.subr.mxu1 %v2731_v38 }
 0x284   : > { %v1329_v28 = vpop.permute.xlu1 %1328 }
 0x288   : > { %v1405_v29 = vpop.permute.xlu1 %1404 }
 0x2c6   : > { %v592_v61 = vpop.f32.mrf.mxu1 }
 0x2c7   : > { %v1128_v62 = vsel %vm521_vm2, %v592_v61, -inf }
 0x2c8   : > { %1129 = vmax.xlane.f32.xlu0 %v1128_v62  ;;  %v2442_v63 = vpop.f32.mrf.mxu1 }
 0x330   : > { %v668_v2 = vpop.f32.mrf.mxu1  ;;  %v744_v3 = vpop.f32.mrf.mxu0 }
 0x331   : > { %v1131_v4 = vsel %vm521_vm2, %v668_v2, -inf  ;;  %v1134_v5 = vsel %vm521_vm2, %v744_v3, -inf }
 0x332   : > { %1132 = vmax.xlane.f32.xlu1 %v1131_v4  ;;  %v2447_v6 = vpop.f32.mrf.mxu1  ;;  %1135 = vmax.xlane.f32.xlu0 %v1134_v5  ;;  %v2452_v7 = vpop.f32.mrf.mxu0 }
 0x334   : > { %v820_v8 = vpop.f32.mrf.mxu1  ;;  %v896_v9 = vpop.f32.mrf.mxu0 }
 0x335   : > { %v1137_v10 = vsel %vm521_vm2, %v820_v8, -inf  ;;  %v1140_v16 = vsel %vm521_vm2, %v896_v9, -inf }
 0x336   : > { %v2457_v11 = vpop.f32.mrf.mxu1  ;;  %1138 = vmax.xlane.f32.xlu0 %v1137_v10  ;;  %v2462_v12 = vpop.f32.mrf.mxu0 }
 0x338   : > { %v972_v13 = vpop.f32.mrf.mxu1  ;;  %v1048_v14 = vpop.f32.mrf.mxu0 }
 0x339   : > { %v1143_v15 = vsel %vm521_vm2, %v972_v13, -inf  ;;  %v1146_v21 = vsel %vm521_vm2, %v1048_v14, -inf }
 0x33a   : > { %1144 = vmax.xlane.f32.xlu1 %v1143_v15  ;;  %v2467_v17 = vpop.f32.mrf.mxu1  ;;  %1141 = vmax.xlane.f32.xlu0 %v1140_v16  ;;  %v2472_v18 = vpop.f32.mrf.mxu0  ;;  %v1858_v15 = vld [vmem:[%s3184_s4 + $0x10] sm:$0xff]  ;;  %v1857_v16 = vld [vmem:[%s3184_s4 + $0x8] sm:$0xff] }
 0x33c   : > { %v1124_v19 = vpop.f32.mrf.mxu1 }
 0x33d   : > { %v1149_v20 = vsel %vm521_vm2, %v1124_v19, -inf }
 0x33e   : > { %1150 = vmax.xlane.f32.xlu1 %v1149_v20  ;;  %v2477_v22 = vpop.f32.mrf.mxu1  ;;  %1147 = vmax.xlane.f32.xlu0 %v1146_v21 }
 0x34f   : > { %1708 = vrot.lane.b32.xlu1 %v2900_v50, %s2737_s26 }
 0x351   : > { %v1130_v24 = vpop.xlane.xlu0 %1129 }
 0x352   : > { %v1152_v25 = vsub.f32 %v592_v61, %v1130_v24 }
 0x354   : > { %v1160_v26 = vmul.f32 1.442695, %v1152_v25  ;;  %1632 = vrot.lane.b32.xlu0 %v2895_v47, %s2737_s26  ;;  %v1856_v25 = vld [vmem:[%s3184_s4] sm:$0xff]  ;;  %s2740_s26 = smov 24  }
 0x356   : > { %2629 = vpow2.f32 %v1160_v26 }
 0x363   : > { %v2965_v27 = vpop.eup %2629 }
 0x364   : > { %2481 = vmatmul.mubr.msk.f32.vlgmr.msra.gmra.mxu0 %vm521_vm2, %v2965_v27  ;;  %v1784_v6 = vsel %vm521_vm2, %v2965_v27, 0.0 }
 0x365   : > { %2489 = vmatpush3.msra.mxu0 %v1329_v28  ;;  %2490 = vmatprep.mubr.msk.f32.mxu0 %vm2732_vm1, %v2731_v38 }
 0x366   : > { %2498 = vmatprep.subr.mxu0 %v2731_v38 }
 0x3bb   : > { %v1133_v30 = vpop.xlane.xlu1 %1132  ;;  %v1136_v31 = vpop.xlane.xlu0 %1135 }
 0x3bc   : > { %v1153_v32 = vsub.f32 %v668_v2, %v1133_v30  ;;  %v1154_v33 = vsub.f32 %v744_v3, %v1136_v31 }
 0x3be   : > { %v1162_v34 = vmul.f32 1.442695, %v1153_v32  ;;  %v1164_v35 = vmul.f32 1.442695, %v1154_v33 }
 0x3bf   : > { %v1139_v36 = vpop.xlane.xlu0 %1138 }
 0x3c0   : > { %2631 = vpow2.f32 %v1162_v34  ;;  %v1155_v37 = vsub.f32 %v820_v8, %v1139_v36 }
 0x3c1   : > { %2633 = vpow2.f32 %v1164_v35 }
 0x3c2   : > { %v1166_v39 = vmul.f32 1.442695, %v1155_v37 }
 0x3c3   : > { %v1145_v40 = vpop.xlane.xlu1 %1144  ;;  %v1142_v41 = vpop.xlane.xlu0 %1141 }
 0x3c4   : > { %2635 = vpow2.f32 %v1166_v39  ;;  %v1157_v42 = vsub.f32 %v972_v13, %v1145_v40  ;;  %v1156_v43 = vsub.f32 %v896_v9, %v1142_v41  ;;  %v1859_v13 = vld [vmem:[%s3184_s4 + $0x18] sm:$0xff] }
 0x3c6   : > { %v1170_v44 = vmul.f32 1.442695, %v1157_v42  ;;  %v1168_v45 = vmul.f32 1.442695, %v1156_v43 }
 0x3c7   : > { %v1151_v46 = vpop.xlane.xlu1 %1150  ;;  %v1148_v47 = vpop.xlane.xlu0 %1147 }
 0x3c8   : > { %2637 = vpow2.f32 %v1170_v44  ;;  %v1159_v48 = vsub.f32 %v1124_v19, %v1151_v46  ;;  %v1158_v49 = vsub.f32 %v1048_v14, %v1148_v47 }
 0x3c9   : > { %2639 = vpow2.f32 %v1168_v45 }
 0x3ca   : > { %v1174_v50 = vmul.f32 1.442695, %v1159_v48  ;;  %v1172_v51 = vmul.f32 1.442695, %v1158_v49 }
 0x3cb   : > { %v1709_v61 = vpop.permute.xlu1 %1708  ;;  %v1633_v63 = vpop.permute.xlu0 %1632 }
 0x3cc   : > { %2641 = vpow2.f32 %v1174_v50 }
 0x3cd   : > { %v2632_v52 = vpop.eup %2631  ;;  %2643 = vpow2.f32 %v1172_v51 }
 0x3ce   : > { %v2634_v53 = vpop.eup %2633  ;;  %2486 = vmatmul.mubr.msk.f32.vlgmr.msra.gmra.mxu1 %vm521_vm2, %v2632_v52  ;;  %v1787_v54 = vsel %vm521_vm2, %v2632_v52, 0.0 }
 0x3cf   : > { %2491 = vmatmul.mubr.msk.f32.vlgmr.msra.gmra.mxu0 %vm521_vm2, %v2634_v53  ;;  %2494 = vmatpush3.msra.mxu1 %v1405_v29  ;;  %v1790_v55 = vsel %vm521_vm2, %v2634_v53, 0.0 }
 0x3d0   : > { %2499 = vmatpush3.msra.mxu0 %v1481_v23  ;;  %1788 = vadd.xlane.f32.xlu0 %v1787_v54 }
 0x3d1   : > { %v2636_v56 = vpop.eup %2635  ;;  %1791 = vadd.xlane.f32.xlu1 %v1790_v55  ;;  %2495 = vmatprep.mubr.msk.f32.mxu1 %vm2732_vm1, %v2731_v38 }
 0x3d2   : > { %2503 = vmatprep.subr.mxu1 %v2731_v38  ;;  %2496 = vmatmul.mubr.msk.f32.vlgmr.msra.gmra.mxu1 %vm521_vm2, %v2636_v56  ;;  %v1793_v57 = vsel %vm521_vm2, %v2636_v56, 0.0 }
 0x3d3   : > { %2504 = vmatpush3.msra.mxu1 %v2946_v59  ;;  %2500 = vmatprep.mubr.msk.f32.mxu0 %vm2732_vm1, %v2731_v38 }
 0x3d4   : > { %1794 = vadd.xlane.f32.xlu0 %v1793_v57  ;;  %2505 = vmatprep.mubr.msk.f32.mxu1 %vm2732_vm1, %v2731_v38 }
 0x3d5   : > { %v2638_v58 = vpop.eup %2637  ;;  %2508 = vmatprep.subr.mxu0 %v2731_v38  ;;  %2513 = vmatprep.subr.mxu1 %v2731_v38 }
 0x3d6   : > { %v2640_v60 = vpop.eup %2639  ;;  %2506 = vmatmul.mubr.msk.f32.vlgmr.msra.gmra.mxu1 %vm521_vm2, %v2638_v58  ;;  %v1799_v62 = vsel %vm521_vm2, %v2638_v58, 0.0 }
 0x3d7   : > { %2501 = vmatmul.mubr.msk.f32.vlgmr.msra.gmra.mxu0 %vm521_vm2, %v2640_v60  ;;  %2514 = vmatpush3.msra.mxu1 %v1709_v61  ;;  %v1796_v5 = vsel %vm521_vm2, %v2640_v60, 0.0 }
 0x3d8   : > { %2509 = vmatpush3.msra.mxu0 %v1633_v63  ;;  %1800 = vadd.xlane.f32.xlu0 %v1799_v62 }
 0x3d9   : > { %v2642_v59 = vpop.eup %2641  ;;  %2510 = vmatprep.mubr.msk.f32.mxu0 %vm2732_vm1, %v2731_v38  ;;  %2515 = vmatprep.mubr.msk.f32.mxu1 %vm2732_vm1, %v2731_v38 }
 0x3da   : > { %v2644_v2 = vpop.eup %2643  ;;  %2516 = vmatmul.mubr.msk.f32.vlgmr.msra.gmra.mxu1 %vm521_vm2, %v2642_v59  ;;  %v1805_v3 = vsel %vm521_vm2, %v2642_v59, 0.0  ;;  %2518 = vmatprep.subr.mxu1 %v1859_v13  ;;  %v2342_v59 = vld [vmem:[%s3185_s5] ss:$0 sm:$0xff] }
 0x3db   : > { %2511 = vmatmul.mubr.msk.f32.vlgmr.msra.gmra.mxu0 %vm521_vm2, %v2644_v2  ;;  %1806 = vadd.xlane.f32.xlu1 %v1805_v3  ;;  %v1802_v4 = vsel %vm521_vm2, %v2644_v2, 0.0 }
 0x3dc   : > { %1803 = vadd.xlane.f32.xlu0 %v1802_v4  ;;  %2519 = vmatpush3.msra.mxu1 %v1859_v13  ;;  %v1993_v13 = vld [vmem:[%s3186_s6 + $0x8] sm:$0xff] }
 0x3dd   : > { %2520 = vmatprep.subr.mxu1 %v1858_v15 }
 0x3de   : > { %2521 = vmatpush3.msra.mxu1 %v1858_v15  ;;  %v2101_v15 = vld [vmem:[%s3188_s8 + $0x78] sm:$0xff] }
 0x3df   : > { %1797 = vadd.xlane.f32.xlu1 %v1796_v5  ;;  %2522 = vmatprep.subr.mxu1 %v1857_v16 }
 0x3e0   : > { %1785 = vadd.xlane.f32.xlu0 %v1784_v6  ;;  %2523 = vmatpush3.msra.mxu1 %v1857_v16  ;;  %v2100_v16 = vld [vmem:[%s3188_s8 + $0x70] sm:$0xff] }
 0x3e1   : > { %2524 = vmatprep.subr.mxu1 %v1856_v25  ;;  %2540 = vmatprep.subr.mxu0 %v2101_v15 }
 0x3e2   : > { %2525 = vmatpush3.msra.mxu1 %v1856_v25  ;;  %2541 = vmatpush3.msra.mxu0 %v2101_v15  ;;  %v2091_v25 = vld [vmem:[%s3188_s8 + $0x28] sm:$0xff] }
 0x3e3   : > { %2542 = vmatprep.subr.mxu0 %v2100_v16 }
 0x3e4   : > { %2543 = vmatpush3.msra.mxu0 %v2100_v16 }
 0x424   : > { %v3002_v7 = vpop.f32.mrf.mxu0 }
 0x426   : > { %v2482_v38 = vpop.f32.mrf.mxu0 }
 0x459   : > { %v1789_v8 = vpop.xlane.xlu0 %1788 }
 0x45a   : > { %v1792_v9 = vpop.xlane.xlu1 %1791  ;;  %2645 = vrcp.f32 %v1789_v8 }
 0x45b   : > { %2647 = vrcp.f32 %v1792_v9 }
 0x45d   : > { %v1795_v10 = vpop.xlane.xlu0 %1794 }
 0x45e   : > { %2649 = vrcp.f32 %v1795_v10 }
 0x461   : > { %v1801_v11 = vpop.xlane.xlu0 %1800 }
 0x462   : > { %2651 = vrcp.f32 %v1801_v11  ;;  %v1995_v11 = vld [vmem:[%s3186_s6 + $0x18] sm:$0xff] }
 0x463   : > { %2529 = vmatprep.subr.mxu1 %v1995_v11 }
 0x464   : > { %v1807_v12 = vpop.xlane.xlu1 %1806 }
 0x465   : > { %v1804_v14 = vpop.xlane.xlu0 %1803  ;;  %2653 = vrcp.f32 %v1807_v12  ;;  %v1994_v12 = vld [vmem:[%s3186_s6 + $0x10] sm:$0xff] }
 0x466   : > { %2655 = vrcp.f32 %v1804_v14  ;;  %v1992_v14 = vld [vmem:[%s3186_s6] sm:$0xff] }
 0x467   : > { %v2646_v17 = vpop.eup %2645 }
 0x468   : > { %v2648_v19 = vpop.eup %2647  ;;  %v1798_v46 = vpop.xlane.xlu1 %1797 }
 0x469   : > { %v1786_v45 = vpop.xlane.xlu0 %1785 }
 0x46a   : > { %2657 = vrcp.f32 %v1786_v45 }
 0x46b   : > { %v2650_v26 = vpop.eup %2649  ;;  %2659 = vrcp.f32 %v1798_v46  ;;  %v2346_v46 = vld [vmem:[%s3181_s1 + $0x3] ss:$0 sm:$0xff] }
 0x46f   : > { %v2652_v30 = vpop.eup %2651 }
 0x472   : > { %v2654_v36 = vpop.eup %2653 }
 0x473   : > { %v2656_v39 = vpop.eup %2655 }
 0x477   : > { %v2658_v47 = vpop.eup %2657 }
 0x478   : > { %v1816_v48 = vmul.f32 %v2658_v47, %v3002_v7  ;;  %v2660_v56 = vpop.eup %2659 }
 0x48e   : > { %v1324_v18 = vpop.f32.mrf.mxu1 }
 0x48f   : > { %v1817_v20 = vmul.f32 %v2646_v17, %v1324_v18  ;;  %v1400_v21 = vpop.f32.mrf.mxu0  ;;  %v2099_v17 = vld [vmem:[%s3188_s8 + $0x68] sm:$0xff]  ;;  %v2098_v18 = vld [vmem:[%s3188_s8 + $0x60] sm:$0xff] }
 0x490   : > { %v1818_v22 = vmul.f32 %v2648_v19, %v1400_v21  ;;  %v2487_v23 = vpop.f32.mrf.mxu1  ;;  %2544 = vmatprep.subr.mxu0 %v2099_v17  ;;  %v2097_v19 = vld [vmem:[%s3188_s8 + $0x58] sm:$0xff]  ;;  %v2095_v21 = vld [vmem:[%s3188_s8 + $0x48] sm:$0xff] }
 0x491   : > { %v2492_v24 = vpop.f32.mrf.mxu0  ;;  %1825 = vrot.lane.b32.xlu0 %v1817_v20, %s3191_s18  ;;  %2545 = vmatpush3.msra.mxu0 %v2099_v17  ;;  %v2096_v20 = vld [vmem:[%s3188_s8 + $0x50] sm:$0xff]  ;;  %v2093_v23 = vld [vmem:[%s3188_s8 + $0x38] sm:$0xff] }
 0x492   : > { %1829 = vrot.lane.b32.xlu1 %v1818_v22, %s2739_s25  ;;  %v1476_v27 = vpop.f32.mrf.mxu1  ;;  %2546 = vmatprep.subr.mxu0 %v2098_v18  ;;  %v2094_v22 = vld [vmem:[%s3188_s8 + $0x40] sm:$0xff]  ;;  %v2092_v24 = vld [vmem:[%s3188_s8 + $0x30] sm:$0xff] }
 0x493   : > { %v1819_v28 = vmul.f32 %v2650_v26, %v1476_v27  ;;  %2547 = vmatpush3.msra.mxu0 %v2098_v18  ;;  %v2090_v26 = vld [vmem:[%s3188_s8 + $0x20] sm:$0xff] }
 0x494   : > { %v2497_v29 = vpop.f32.mrf.mxu1  ;;  %2548 = vmatprep.subr.mxu0 %v2097_v19 }
 0x495   : > { %2549 = vmatpush3.msra.mxu0 %v2097_v19 }
 0x496   : > { %1833 = vrot.lane.b32.xlu1 %v1819_v28, %s2740_s26  ;;  %v1628_v31 = vpop.f32.mrf.mxu1  ;;  %2550 = vmatprep.subr.mxu0 %v2096_v20 }
 0x497   : > { %v1552_v32 = vpop.f32.mrf.mxu0  ;;  %v1821_v33 = vmul.f32 %v2652_v30, %v1628_v31  ;;  %2551 = vmatpush3.msra.mxu0 %v2096_v20 }
 0x498   : > { %v2507_v34 = vpop.f32.mrf.mxu1  ;;  %v1820_v57 = vmul.f32 %v2660_v56, %v1552_v32  ;;  %2552 = vmatprep.subr.mxu0 %v2095_v21  ;;  %v2087_v56 = vld [vmem:[%s3188_s8 + $0x8] sm:$0xff] }
 0x499   : > { %v2502_v35 = vpop.f32.mrf.mxu0  ;;  %2553 = vmatpush3.msra.mxu0 %v2095_v21 }
 0x49a   : > { %1842 = vrot.lane.b32.xlu1 %v1821_v33, %s3191_s18  ;;  %v1780_v37 = vpop.f32.mrf.mxu1  ;;  %2554 = vmatprep.subr.mxu0 %v2094_v22  ;;  %s2741_s18 = smov [#allocation2]  }
 0x49b   : > { %v1704_v40 = vpop.f32.mrf.mxu0  ;;  %v1823_v41 = vmul.f32 %v2654_v36, %v1780_v37  ;;  %2555 = vmatpush3.msra.mxu0 %v2094_v22  ;;  %s2673_s30 = sshll.u32 %s2741_s18, 4  ;;  %s2674_s30 = int_to_ptr.vmem [resolvable:$false] %s2673_s30 }
 0x49c   : > { %v1822_v42 = vmul.f32 %v2656_v39, %v1704_v40  ;;  %v2517_v43 = vpop.f32.mrf.mxu1  ;;  %2556 = vmatprep.subr.mxu0 %v2093_v23  ;;  %s2675_s11 = scalar_lea.vmem %s2674_s30, 512 }
 0x49d   : > { %v2512_v44 = vpop.f32.mrf.mxu0  ;;  %2557 = vmatpush3.msra.mxu0 %v2093_v23 }
 0x49e   : > { %1850 = vrot.lane.b32.xlu1 %v1823_v41, %s2740_s26  ;;  %1846 = vrot.lane.b32.xlu0 %v1822_v42, %s2739_s25  ;;  %v2345_v44 = vld [vmem:[%s3181_s1 + $0x2] ss:$0 sm:$0xff]  ;;  %s2244_s25 = sshll.u32 %s353_s21, 4  ;;  %s3136_s25 = int_to_ptr.vmem [resolvable:$true] %s2244_s25 }
 0x49f   : > { %2558 = vmatprep.subr.mxu0 %v2092_v24  ;;  %s2669_s28 = scalar_lea.vmem %s3136_s25, 256  ;;  %p2676_p0 = scmp.lt.s32.totalorder %s3136_s25, %s2674_s30 }
 0x4a0   : > { %2559 = vmatpush3.msra.mxu0 %v2092_v24  ;;  %p2670_p11 = scmp.ne.s32.totalorder %s3136_s25, %s2669_s28  ;;  %p2677_p1 = scmp.lt.s32.totalorder %s2675_s11, %s2669_s28 }
 0x4a1   : > { %2560 = vmatprep.subr.mxu0 %v2091_v25 }
 0x4a2   : > { %2561 = vmatpush3.msra.mxu0 %v2091_v25  ;;  %p2671_p12 = pnand %p2670_p11, %p2836_p5  ;;  %p2678_p2 = por %p2677_p1, %p2676_p0 }
 0x4a3   : > { %2562 = vmatprep.subr.mxu0 %v2090_v26 }
 0x4a4   : > { %2563 = vmatpush3.msra.mxu0 %v2090_v26  ;;  %p2672_p13 = pneg %p2671_p12 }
 0x4a6   : > { %p2679_p3 = pnand %p2678_p2, %p2672_p13 }
 0x503   : > { %v1826_v49 = vpop.permute.xlu0 %1825 }
 0x504   : > { %v1830_v50 = vpop.permute.xlu1 %1829  ;;  %v1836_v51 = vsel %vm521_vm2, %v1816_v48, %v1826_v49 }
 0x505   : > { %v1838_v53 = vsel %vm1837_vm3, %v1836_v51, %v1830_v50 }
 0x508   : > { %v1834_v52 = vpop.permute.xlu1 %1833 }
 0x509   : > { %v1840_v54 = vsel %vm1839_vm4, %v1838_v53, %v1834_v52 }
 0x50a   : > { %2526 = vmatprep.mubr.msk.f32.mxu1 %vm369_vm0, %v1840_v54  ;;  %v2089_v54 = vld [vmem:[%s3188_s8 + $0x18] sm:$0xff] }
 0x50b   : > { %2564 = vmatprep.subr.mxu0 %v2089_v54 }
 0x50c   : > { %v1843_v55 = vpop.permute.xlu1 %1842  ;;  %2565 = vmatpush3.msra.mxu0 %v2089_v54 }
 0x50d   : > { %v1853_v58 = vsel %vm521_vm2, %v1820_v57, %v1843_v55  ;;  %v2088_v55 = vld [vmem:[%s3188_s8 + $0x10] sm:$0xff]  ;;  %v2086_v57 = vld [vmem:[%s3188_s8] sm:$0xff] }
 0x50e   : > { %2566 = vmatprep.subr.mxu0 %v2088_v55 }
 0x50f   : > { %2567 = vmatpush3.msra.mxu0 %v2088_v55 }
 0x510   : > { %v1851_v60 = vpop.permute.xlu1 %1850  ;;  %v1847_v61 = vpop.permute.xlu0 %1846  ;;  %2568 = vmatprep.subr.mxu0 %v2087_v56 }
 0x511   : > { %v1854_v62 = vsel %vm1837_vm3, %v1853_v58, %v1847_v61  ;;  %2569 = vmatpush3.msra.mxu0 %v2087_v56  ;;  %v2347_v58 = vld [vmem:[%s3187_s7] ss:$0 sm:$0xff] }
 0x512   : > { %v1855_v63 = vsel %vm1839_vm4, %v1854_v62, %v1851_v60  ;;  %2570 = vmatprep.subr.mxu0 %v2086_v57 }
 0x513   : > { %2527 = vmatmul.mubr.msk.f32.vlgmr.msra.gmra.mxu1 %vm369_vm0, %v1855_v63  ;;  %2571 = vmatpush3.msra.mxu0 %v2086_v57 }
 0x514   : > { %2530 = vmatpush3.msra.mxu1 %v1995_v11 }
 0x515   : > { %2531 = vmatprep.subr.mxu1 %v1994_v12 }
 0x516   : > { %2532 = vmatpush3.msra.mxu1 %v1994_v12 }
 0x517   : > { %2533 = vmatprep.subr.mxu1 %v1993_v13 }
 0x518   : > { %2534 = vmatpush3.msra.mxu1 %v1993_v13 }
 0x519   : > { %2535 = vmatprep.subr.mxu1 %v1992_v14 }
 0x51a   : > { %2536 = vmatpush3.msra.mxu1 %v1992_v14 }
 0x5d3   : > { %v2528_v2 = vpop.f32.mrf.mxu1 }
 0x5d4   : > { %v1945_v3 = vadd.f32 %v2528_v2, %v2342_v59 }
 0x5d5   : > { %v1939_v4 = vpop.f32.mrf.mxu1 }
 0x5d6   : > { %v3027_v5 = vadd.f32 %v1945_v3, %v2852_v1  ;;  %v1940_v6 = vadd.f32 %v2342_v59, %v1939_v4  ;;  %v2350_v3 = vld [vmem:[%s3189_s9] ss:$0 sm:$0xff] }
 0x5d8   : > { %v3030_v7 = vadd.f32 %v1940_v6, %v2850_v0  ;;  %v1953_v38 = vsel %vm369_vm0, %v3027_v5, 0.0  ;;  %v1959_v1 = vmul.f32 %v3027_v5, %v3027_v5 }
 0x5d9   : > { %1954 = vadd.xlane.f32.xlu1 %v1953_v38 }
 0x5da   : > { %v1950_v8 = vsel %vm369_vm0, %v3030_v7, 0.0  ;;  %v1958_v9 = vmul.f32 %v3030_v7, %v3030_v7  ;;  %v1963_v0 = vsel %vm369_vm0, %v1959_v1, 0.0 }
 0x5db   : > { %1951 = vadd.xlane.f32.xlu0 %v1950_v8 }
 0x5dc   : > { %v1960_v10 = vsel %vm369_vm0, %v1958_v9, 0.0 }
 0x5df   : > { %1961 = vadd.xlane.f32.xlu0 %v1960_v10 }
 0x5e3   : > { %1964 = vadd.xlane.f32.xlu0 %v1963_v0 }
 0x662   : > { %v1955_v29 = vpop.xlane.xlu1 %1954 }
 0x663   : > { %v1957_v31 = vmul.f32 0.03125, %v1955_v29  ;;  %v2351_v29 = vld [vmem:[%s3181_s1 + $0x4] ss:$0 sm:$0xff] }
 0x664   : > { %v1952_v27 = vpop.xlane.xlu0 %1951 }
 0x665   : > { %v1956_v28 = vmul.f32 0.03125, %v1952_v27  ;;  %v1969_v36 = vmul.f32 %v1957_v31, %v1957_v31  ;;  %v1973_v47 = vsub.f32 %v3027_v5, %v1957_v31 }
 0x667   : > { %v1968_v32 = vmul.f32 %v1956_v28, %v1956_v28  ;;  %v1972_v42 = vsub.f32 %v3030_v7, %v1956_v28 }
 0x668   : > { %v1962_v30 = vpop.xlane.xlu0 %1961 }
 0x669   : > { %v1966_v33 = vmul.f32 0.03125, %v1962_v30 }
 0x66b   : > { %v1970_v34 = vsub.f32 %v1966_v33, %v1968_v32  ;;  %v2352_v33 = vld [vmem:[%s3181_s1 + $0x5] ss:$0 sm:$0xff] }
 0x66c   : > { %v1965_v35 = vpop.xlane.xlu0 %1964 }
 0x66d   : > { %v1974_v37 = vadd.f32 1e-05, %v1970_v34  ;;  %v1967_v39 = vmul.f32 0.03125, %v1965_v35 }
 0x66f   : > { %2661 = vrsqrt.f32 %v1974_v37  ;;  %v1971_v40 = vsub.f32 %v1967_v39, %v1969_v36 }
 0x671   : > { %v1975_v41 = vadd.f32 1e-05, %v1971_v40 }
 0x673   : > { %2663 = vrsqrt.f32 %v1975_v41 }
 0x67c   : > { %v2662_v43 = vpop.eup %2661 }
 0x67d   : > { %v1978_v45 = vmul.f32 %v2662_v43, %v1972_v42 }
 0x67f   : > { %v1984_v48 = vmul.f32 %v2345_v44, %v1978_v45 }
 0x680   : > { %v2664_v49 = vpop.eup %2663 }
 0x681   : > { %v1979_v50 = vmul.f32 %v2664_v49, %v1973_v47  ;;  %v1990_v51 = vadd.f32 %v2346_v46, %v1984_v48 }
 0x683   : > { %v1985_v52 = vmul.f32 %v2345_v44, %v1979_v50  ;;  %2537 = vmatprep.mubr.msk.f32.mxu1 %vm369_vm0, %v1990_v51 }
 0x685   : > { %v1991_v53 = vadd.f32 %v2346_v46, %v1985_v52 }
 0x687   : > { %2538 = vmatmul.mubr.msk.f32.vlgmr.msra.gmra.mxu1 %vm369_vm0, %v1991_v53 }
 0x747   : > { %v2539_v60 = vpop.f32.mrf.mxu1 }
 0x748   : > { %v2081_v61 = vadd.f32 %v2539_v60, %v2347_v58 }
 0x749   : > { %v2075_v62 = vpop.f32.mrf.mxu1 }
 0x74a   : > { %v2076_v63 = vadd.f32 %v2347_v58, %v2075_v62  ;;  %v2085_v2 = vmax.f32 %v2081_v61, 0.0 }
 0x74c   : > { %v2084_v59 = vmax.f32 %v2076_v63, 0.0 }
 0x74e   : > { %2572 = vmatprep.mubr.f32.mxu0 %v2084_v59 }
 0x74f   : > { %2573 = vmatmul.mubr.f32.vlgmr.msra.gmra.mxu0 %v2085_v2 }
 0x80f   : > { %v2574_v4 = vpop.f32.mrf.mxu0 }
 0x810   : > { %v2181_v5 = vadd.f32 %v2574_v4, %v2350_v3 }
 0x811   : > { %v2175_v6 = vpop.f32.mrf.mxu0 }
 0x812   : > { %v2185_v7 = vadd.f32 %v2181_v5, %v1991_v53  ;;  %v2176_v38 = vadd.f32 %v2350_v3, %v2175_v6 }
 0x814   : > { %v2184_v8 = vadd.f32 %v2176_v38, %v1990_v51  ;;  %v2189_v9 = vsel %vm369_vm0, %v2185_v7, 0.0  ;;  %v2195_v10 = vmul.f32 %v2185_v7, %v2185_v7 }
 0x815   : > { %2190 = vadd.xlane.f32.xlu1 %v2189_v9 }
 0x816   : > { %v2186_v1 = vsel %vm369_vm0, %v2184_v8, 0.0  ;;  %v2194_v0 = vmul.f32 %v2184_v8, %v2184_v8  ;;  %v2199_v11 = vsel %vm369_vm0, %v2195_v10, 0.0 }
 0x817   : > { %2187 = vadd.xlane.f32.xlu0 %v2186_v1 }
 0x818   : > { %v2196_v12 = vsel %vm369_vm0, %v2194_v0, 0.0 }
 0x819   : > { %2200 = vadd.xlane.f32.xlu1 %v2199_v11 }
 0x81b   : > { %2197 = vadd.xlane.f32.xlu0 %v2196_v12 }
 0x89e   : > { %v2191_v13 = vpop.xlane.xlu1 %2190 }
 0x89f   : > { %v2193_v14 = vmul.f32 0.03125, %v2191_v13 }
 0x8a0   : > { %v2188_v15 = vpop.xlane.xlu0 %2187 }
 0x8a1   : > { %v2192_v16 = vmul.f32 0.03125, %v2188_v15  ;;  %v2205_v18 = vmul.f32 %v2193_v14, %v2193_v14  ;;  %v2209_v27 = vsub.f32 %v2185_v7, %v2193_v14 }
 0x8a2   : > { %v2201_v17 = vpop.xlane.xlu1 %2200 }
 0x8a3   : > { %v2203_v19 = vmul.f32 0.03125, %v2201_v17  ;;  %v2204_v21 = vmul.f32 %v2192_v16, %v2192_v16  ;;  %v2208_v30 = vsub.f32 %v2184_v8, %v2192_v16 }
 0x8a4   : > { %v2198_v20 = vpop.xlane.xlu0 %2197 }
 0x8a5   : > { %v2207_v22 = vsub.f32 %v2203_v19, %v2205_v18  ;;  %v2202_v23 = vmul.f32 0.03125, %v2198_v20 }
 0x8a7   : > { %v2211_v24 = vadd.f32 1e-05, %v2207_v22  ;;  %v2206_v25 = vsub.f32 %v2202_v23, %v2204_v21 }
 0x8a9   : > { %2665 = vrsqrt.f32 %v2211_v24  ;;  %v2210_v26 = vadd.f32 1e-05, %v2206_v25 }
 0x8ab   : > { %2667 = vrsqrt.f32 %v2210_v26 }
 0x8b6   : > { %v2666_v28 = vpop.eup %2665 }
 0x8b7   : > { %v2215_v31 = vmul.f32 %v2666_v28, %v2209_v27 }
 0x8b8   : > { %v2668_v32 = vpop.eup %2667 }
 0x8b9   : > { %v2214_v34 = vmul.f32 %v2668_v32, %v2208_v30  ;;  %v2221_v35 = vmul.f32 %v2351_v29, %v2215_v31 }
 0x8bb   : > { %v2220_v36 = vmul.f32 %v2351_v29, %v2214_v34  ;;  %v2227_v37 = vadd.f32 %v2352_v33, %v2221_v35 }
 0x8bd   : > { %v2226_v39 = vadd.f32 %v2352_v33, %v2220_v36  ;;  %2229 = vst.msk [vmem:[%s353_s21 + $0x8] sm:$0xff] %vm369_vm0, %v2227_v37 }
 0x8bf   : > { %2228 = vst.msk [vmem:[%s353_s21] sm:$0xff] %vm369_vm0, %v2226_v39 }
 0x8c0   : > { %2682 = shalt.err (!%p2679_p3)
}
 0x8c1   : > { %s2683_s27 = scalar_lea.hbm %s3133_s29, 256  ;;  %s2687_s21 = scalar_lea.hbm %s3190_s10, 512 }
 0x8c2   : > { %p2684_p4 = scmp.ne.s32.totalorder %s3133_s29, %s2683_s27  ;;  %p2688_p9 = scmp.lt.s32.totalorder %s3133_s29, %s3190_s10 }
 0x8c3   : > { %p2689_p10 = scmp.lt.s32.totalorder %s2687_s21, %s2683_s27 }
 0x8c4   : > { %p2685_p7 = pnand %p2684_p4, %p2836_p5 }
 0x8c5   : > { %p2690_p11 = por %p2689_p10, %p2688_p9 }
 0x8c6   : > { %p2686_p8 = pneg %p2685_p7 }
 0x8c8   : > { %p2691_p12 = pnand %p2690_p11, %p2686_p8 }
 0x8ca   : > { %2694 = shalt.err (!%p2691_p12)
}
 0x8cb   : > { %s2742_s28 = smov 128   ;;  %s3194_s30 = smov 8  }
 0x8cc   : > { %2575 = dma.vmem_to_hbm [thread:$0]  (%p2836_p5), %s3136_s25, 256, %s3133_s29, %s3139_s17, %s2742_s28, %s2742_s28, %s3194_s30  }
 0x8cd PF: > { %p2581_p13 = scmp.ge.s32.totalorder %s2729_s16, 2  ;;  %s2259_s11 = sand.u32 1, %s2717_s13  }
 0x8ce   : > { %s2260_s27 = scalar_lea.sflag [#allocation3], %s2259_s11 }
 0x8cf   : > { %p2578_p0 = pnand %p2581_p13, %p2840_p6 }
 0x8d1   : > { %p2579_p1 = pneg %p2578_p0 }
 0x8d3   : > { %2712 = dma.done.wait (%p2579_p1), %s2260_s27, 256  }
 0x8d4   : > { %2714 = vsyncadd (%p2579_p1), %s2260_s27, 4294967040  ;;  %p20_p2 = scmp.ge.s32.totalorder %s2823_s19, 4   ;;  %s3195_s13 = smov %s2721_s14 }
 0x8d5   : > { %s3196_s14 = smov %s2725_s15  ;;  %s3197_s15 = smov %s2834_s22 }
 0x8d6   : > { %s3198_s16 = smov %s2823_s19  ;;  %22 = sbr.rel (!%p20_p2) target bundleno = 3 (0x3), region = 95 }
 0x8db   :  { %2265 = vsyncpa [#allocation3], 1 }
 0x8dc   :  { %2267 = vsyncpa [#allocation3 + $0x1], 1 }

</bundles_post_ra>
